<compile_context>
chip_gen: v7x
topology: tpu7x:2x2x1
jax: 0.10.0
libtpu: 0.0.40
codegen_flags: <defaults>
</compile_context>

<pallas_src>
from functools import partial

import jax
import jax.numpy as jnp
from jax.experimental import pallas as pl
from jax.experimental.pallas import tpu as pltpu


def space_att2_kernel(x_ref, wqkv_ref, bqkv_ref, mask_ref, scal_ref, o_ref, *, C):
    # x_ref block: (1, C, N) -- TB whole (b, h) attention slices, channel-major.
    x = x_ref[0]                                                     # (C, N)

    # Fused Q/K/V projection: one lane-dense MXU matmul.  1/kd already folded
    # into the query rows of wqkv / bqkv.
    qkv = jnp.dot(wqkv_ref[...], x, preferred_element_type=jnp.float32) + bqkv_ref[...]
    q = qkv[:C]                                                      # (C, N)
    k = qkv[C:2 * C]                                                 # (C, N)
    v = qkv[2 * C:]                                                  # (C, N)

    # Scores over all N positions, masked to the block-diagonal (per-slice) part:
    # s[i, j] = sum_c q[c, i] * k[c, j]
    s = jax.lax.dot_general(q, k, (((0,), (0,)), ((), ())),
                            preferred_element_type=jnp.float32)      # (N, N)
    s = s + mask_ref[...]                                            # -1e30 off-slice
    s = s - jnp.max(s, axis=-1, keepdims=True)
    p = jnp.exp(s)
    p = p * pl.reciprocal(jnp.sum(p, axis=-1, keepdims=True), approx=True)

    # line[c, i] = sum_j p[i, j] * v[c, j]
    line = jax.lax.dot_general(v, p, (((1,), (1,)), ((), ())),
                               preferred_element_type=jnp.float32)   # (C, N)

    # Linear(num_head, 1) over identical stacked heads == scale + shift.
    o_ref[0] = line * scal_ref[0] + scal_ref[1]


def _pick_block_slices(H, W, max_positions=512):
    """How many h-slices per grid step.  Block last dim TB*W must be a multiple
    of 128 or the full extent H*W (Mosaic (8,128) rule); TB must divide H so a
    block never splits an attention slice."""
    legal = [tb for tb in range(1, H + 1)
             if H % tb == 0 and ((tb * W) % 128 == 0 or tb == H)]
    bounded = [tb for tb in legal if tb * W <= max_positions]
    return max(bounded) if bounded else min(legal)


def space_att2_forward(x, params, num_head, *, max_positions=512):
    """x: NCHW float32 (B, dim_input, H, Input_len).  Returns (B, Input_len, dim_input, H)."""
    B, C, H, W = x.shape
    wq, bq, wk, bk, wv, bv, w1, b1 = params

    kd = jnp.sqrt(jnp.float32(W) / jnp.float32(num_head))
    # Fold 1/kd into the query projection; stack Q/K/V into one weight.
    wqkv = jnp.concatenate([wq / kd, wk, wv], axis=0).astype(jnp.float32)        # (3C, C)
    bqkv = jnp.concatenate([bq / kd, bk, bv], axis=0).reshape(3 * C, 1)
    bqkv = bqkv.astype(jnp.float32)
    # Linear(num_head, 1) over identical heads collapses to scale + shift.
    scal = jnp.stack([jnp.sum(w1), b1.reshape(())]).astype(jnp.float32)          # (2,)

    TB = _pick_block_slices(H, W, max_positions)
    N = TB * W
    n_h = H // TB

    # Additive block-diagonal mask: position i attends only within its own h slice.
    pos = jnp.arange(N) // W
    mask = jnp.where(pos[:, None] == pos[None, :], 0.0, -1e30).astype(jnp.float32)

    # Free reshape: no transpose / extra HBM pass on the input.
    x_flat = x.reshape(B, C, H * W)

    tile_spec = pl.BlockSpec((1, C, N), lambda b, j: (b, 0, j))
    out_flat = pl.pallas_call(
        partial(space_att2_kernel, C=C),
        out_shape=jax.ShapeDtypeStruct((B, C, H * W), jnp.float32),
        grid=(B, n_h),
        in_specs=[
            tile_spec,                                             # x block
            pl.BlockSpec((3 * C, C), lambda b, j: (0, 0)),         # fused QKV weight
            pl.BlockSpec((3 * C, 1), lambda b, j: (0, 0)),         # fused QKV bias
            pl.BlockSpec((N, N), lambda b, j: (0, 0)),             # block-diag mask
            pl.BlockSpec(memory_space=pltpu.MemorySpace.SMEM),     # [sum(w1), b1]
        ],
        out_specs=tile_spec,
        compiler_params=pltpu.CompilerParams(
            dimension_semantics=("parallel", "parallel"),
            vmem_limit_bytes=64 * 1024 * 1024,
        ),
    )(x_flat, wqkv, bqkv, mask, scal)

    # The module's own output permute: (B, H, W, C) -> (B, W, C, H); in our
    # channel-major buffer that is (B, C, H, W) -> (B, W, C, H).
    return jnp.transpose(out_flat.reshape(B, C, H, W), (0, 3, 1, 2))


def space_att2_reference(x, params, num_head):
    """Pure-JAX transcription of the PyTorch forward (dropout = identity)."""
    wq, bq, wk, bk, wv, bv, w1, b1 = params
    xp = jnp.transpose(x, (0, 2, 3, 1))                       # (B, H, W, C)
    q = xp @ wq.T + bq
    k = xp @ wk.T + bk
    v = xp @ wv.T + bv
    kT = jnp.swapaxes(k, -2, -1)                              # (B, H, C, W)
    kd = jnp.sqrt(jnp.float32(kT.shape[-1]) / jnp.float32(num_head))
    attn = jax.nn.softmax(q @ kT / kd, axis=-1)               # (B, H, W, W)
    line = attn @ v                                           # (B, H, W, C)
    stacked = jnp.stack([line] * num_head, axis=-1)           # (B, H, W, C, nh)
    res = jnp.einsum('bhwcn,n->bhwc', stacked, w1) + b1.reshape(())
    return jnp.transpose(res, (0, 2, 3, 1))                   # (B, W, C, H)


if __name__ == "__main__":
    # Small, forward-consistent shapes: x is (B, dim_input, H, Input_len).
    B, dim_input, H, Input_len = 2, 8, 4, 16
    num_head = 4

    key = jax.random.PRNGKey(0)
    ks = jax.random.split(key, 9)

    x = jax.random.normal(ks[0], (B, dim_input, H, Input_len), jnp.float32)

    scale = 0.2
    wq = scale * jax.random.normal(ks[1], (dim_input, dim_input), jnp.float32)
    bq = scale * jax.random.normal(ks[2], (dim_input,), jnp.float32)
    wk = scale * jax.random.normal(ks[3], (dim_input, dim_input), jnp.float32)
    bk = scale * jax.random.normal(ks[4], (dim_input,), jnp.float32)
    wv = scale * jax.random.normal(ks[5], (dim_input, dim_input), jnp.float32)
    bv = scale * jax.random.normal(ks[6], (dim_input,), jnp.float32)
    w1 = scale * jax.random.normal(ks[7], (num_head,), jnp.float32)   # Linear(num_head, 1).weight
    b1 = scale * jax.random.normal(ks[8], (1,), jnp.float32)          # Linear(num_head, 1).bias

    params = (wq, bq, wk, bk, wv, bv, w1, b1)

    out = space_att2_forward(x, params, num_head)
    out = jax.block_until_ready(out)

    ref = space_att2_reference(x, params, num_head)
    assert out.shape == (B, Input_len, dim_input, H), out.shape
    assert jnp.allclose(out, ref, atol=5e-3, rtol=5e-3), (
        "mismatch vs reference: max abs err = %g" % float(jnp.max(jnp.abs(out - ref))))

    print("KERNEL_OK")
</pallas_src>

<mosaic_0001>
module attributes {stable_mosaic.version = 11 : i64} {
  func.func @space_att2_kernel(%arg0: i32, %arg1: i32, %arg2: memref<1x8x64xf32, #tpu.memory_space<vmem>>, %arg3: memref<24x8xf32, #tpu.memory_space<vmem>>, %arg4: memref<24x1xf32, #tpu.memory_space<vmem>>, %arg5: memref<64x64xf32, #tpu.memory_space<vmem>>, %arg6: memref<2xf32, #tpu.memory_space<smem>>, %arg7: memref<1x8x64xf32, #tpu.memory_space<vmem>>) attributes {dimension_semantics = [#tpu.dimension_semantics<parallel>, #tpu.dimension_semantics<parallel>], iteration_bounds = array<i64: 2, 1>, scalar_prefetch = 0 : i64, scratch_operands = 0 : i64, tpu.core_type = #tpu.core_type<tc>, window_params = [{transform_indices = @transform_0, window_bounds = array<i64: 1, 8, 64>}, {pipeline_mode = #tpu.pipeline_mode<synchronous>, transform_indices = @transform_1, window_bounds = array<i64: 24, 8>}, {pipeline_mode = #tpu.pipeline_mode<synchronous>, transform_indices = @transform_2, window_bounds = array<i64: 24, 1>}, {pipeline_mode = #tpu.pipeline_mode<synchronous>, transform_indices = @transform_3, window_bounds = array<i64: 64, 64>}, {transform_indices = @transform_4, window_bounds = array<i64: 2>}, {transform_indices = @transform_5, window_bounds = array<i64: 1, 8, 64>}]} {
    %c0 = arith.constant 0 : index
    %c0_0 = arith.constant 0 : index
    %c0_1 = arith.constant 0 : index
    %0 = vector.load %arg2[%c0, %c0_0, %c0_1] : memref<1x8x64xf32, #tpu.memory_space<vmem>>, vector<1x8x64xf32>
    %1 = vector.shape_cast %0 : vector<1x8x64xf32> to vector<8x64xf32>
    %c0_2 = arith.constant 0 : index
    %c0_3 = arith.constant 0 : index
    %2 = vector.load %arg3[%c0_2, %c0_3] : memref<24x8xf32, #tpu.memory_space<vmem>>, vector<24x8xf32>
    %cst = arith.constant dense<0.000000e+00> : vector<24x64xf32>
    %3 = tpu.matmul %2, %1, %cst {dimension_numbers = #tpu.dot_dimension_numbers<[1], [0], [0], [1], [0, 0, 1, 1], [], []>} : vector<24x8xf32>, vector<8x64xf32>, vector<24x64xf32> -> vector<24x64xf32>
    %c0_4 = arith.constant 0 : index
    %c0_5 = arith.constant 0 : index
    %4 = vector.load %arg4[%c0_4, %c0_5] : memref<24x1xf32, #tpu.memory_space<vmem>>, vector<24x1xf32>
    %5 = vector.broadcast %4 : vector<24x1xf32> to vector<24x64xf32>
    %6 = arith.addf %3, %5 : vector<24x64xf32>
    %7 = vector.extract_strided_slice %6 {offsets = [0, 0], sizes = [8, 64], strides = [1, 1]} : vector<24x64xf32> to vector<8x64xf32>
    %8 = vector.extract_strided_slice %6 {offsets = [8, 0], sizes = [8, 64], strides = [1, 1]} : vector<24x64xf32> to vector<8x64xf32>
    %9 = vector.extract_strided_slice %6 {offsets = [16, 0], sizes = [8, 64], strides = [1, 1]} : vector<24x64xf32> to vector<8x64xf32>
    %cst_6 = arith.constant dense<0.000000e+00> : vector<64x64xf32>
    %10 = tpu.matmul %7, %8, %cst_6 {dimension_numbers = #tpu.dot_dimension_numbers<[0], [0], [1], [1], [0, 1, 1, 1], [], []>} : vector<8x64xf32>, vector<8x64xf32>, vector<64x64xf32> -> vector<64x64xf32>
    %c0_7 = arith.constant 0 : index
    %c0_8 = arith.constant 0 : index
    %11 = vector.load %arg5[%c0_7, %c0_8] : memref<64x64xf32, #tpu.memory_space<vmem>>, vector<64x64xf32>
    %12 = arith.addf %10, %11 : vector<64x64xf32>
    %cst_9 = arith.constant dense<0xFF800000> : vector<64xf32>
    %13 = vector.multi_reduction <maximumf>, %12, %cst_9 [1] : vector<64x64xf32> to vector<64xf32>
    %14 = vector.shape_cast %13 : vector<64xf32> to vector<64x1xf32>
    %15 = vector.broadcast %14 : vector<64x1xf32> to vector<64x64xf32>
    %16 = arith.subf %12, %15 : vector<64x64xf32>
    %17 = math.exp %16 : vector<64x64xf32>
    %cst_10 = arith.constant dense<0.000000e+00> : vector<64xf32>
    %18 = vector.multi_reduction <add>, %17, %cst_10 [1] : vector<64x64xf32> to vector<64xf32>
    %19 = vector.shape_cast %18 : vector<64xf32> to vector<64x1xf32>
    %20 = tpu.reciprocal %19 {approx = true} : vector<64x1xf32> -> vector<64x1xf32>
    %21 = vector.broadcast %20 : vector<64x1xf32> to vector<64x64xf32>
    %22 = arith.mulf %17, %21 : vector<64x64xf32>
    %cst_11 = arith.constant dense<0.000000e+00> : vector<8x64xf32>
    %23 = tpu.matmul %9, %22, %cst_11 {dimension_numbers = #tpu.dot_dimension_numbers<[1], [1], [0], [0], [0, 0, 1, 0], [], []>} : vector<8x64xf32>, vector<64x64xf32>, vector<8x64xf32> -> vector<8x64xf32>
    %c0_12 = arith.constant 0 : index
    %24 = memref.load %arg6[%c0_12] : memref<2xf32, #tpu.memory_space<smem>>
    %25 = vector.broadcast %24 : f32 to vector<8x64xf32>
    %26 = arith.mulf %23, %25 : vector<8x64xf32>
    %c1 = arith.constant 1 : index
    %27 = memref.load %arg6[%c1] : memref<2xf32, #tpu.memory_space<smem>>
    %28 = vector.broadcast %27 : f32 to vector<8x64xf32>
    %29 = arith.addf %26, %28 : vector<8x64xf32>
    %c0_13 = arith.constant 0 : index
    %c0_14 = arith.constant 0 : index
    %c0_15 = arith.constant 0 : index
    %30 = vector.load %arg7[%c0_13, %c0_14, %c0_15] : memref<1x8x64xf32, #tpu.memory_space<vmem>>, vector<1x8x64xf32>
    %31 = vector.shape_cast %30 : vector<1x8x64xf32> to vector<8x64xf32>
    %32 = vector.shape_cast %29 : vector<8x64xf32> to vector<1x8x64xf32>
    tpu.vector_store %arg7[%c0_13, %c0_14, %c0_15], %32 {strides = array<i32>} : memref<1x8x64xf32, #tpu.memory_space<vmem>>, vector<1x8x64xf32>,
    return
  }
  func.func @transform_0(%arg0: i32, %arg1: i32) -> (i32, i32, i32) {
    %c0_i32 = arith.constant 0 : i32
    %c0_i32_0 = arith.constant 0 : i32
    return %arg0, %c0_i32, %arg1 : i32, i32, i32
  }
  func.func @transform_1(%arg0: i32, %arg1: i32) -> (i32, i32) {
    %c0_i32 = arith.constant 0 : i32
    %c0_i32_0 = arith.constant 0 : i32
    %c0_i32_1 = arith.constant 0 : i32
    return %c0_i32, %c0_i32_0 : i32, i32
  }
  func.func @transform_2(%arg0: i32, %arg1: i32) -> (i32, i32) {
    %c0_i32 = arith.constant 0 : i32
    %c0_i32_0 = arith.constant 0 : i32
    %c0_i32_1 = arith.constant 0 : i32
    return %c0_i32, %c0_i32_0 : i32, i32
  }
  func.func @transform_3(%arg0: i32, %arg1: i32) -> (i32, i32) {
    %c0_i32 = arith.constant 0 : i32
    %c0_i32_0 = arith.constant 0 : i32
    %c0_i32_1 = arith.constant 0 : i32
    return %c0_i32, %c0_i32_0 : i32, i32
  }
  func.func @transform_4(%arg0: i32, %arg1: i32) -> i32 {
    %c0_i32 = arith.constant 0 : i32
    %c0_i32_0 = arith.constant 0 : i32
    return %c0_i32 : i32
  }
  func.func @transform_5(%arg0: i32, %arg1: i32) -> (i32, i32, i32) {
    %c0_i32 = arith.constant 0 : i32
    %c0_i32_0 = arith.constant 0 : i32
    return %arg0, %c0_i32, %arg1 : i32, i32, i32
  }
}

</mosaic_0001>

<bundles_post_ra>
// kernel: tpu_custom_call.1
= control target key start
LH: loop header
LB: loop body
LE: loop exit
PB: predicated region body
PF: predicated region fallthrough
CT: control target
= control target key end

     0   :  { %10 = vsyncpa [#allocation3], 0  ;;  %s1810_s0 = inlined_call_operand.hbm [shape: f32[2,8,64], index: 0, kind: input, shape index: {}]   ;;  %s1811_s1 = inlined_call_operand.hbm [shape: f32[24,8], index: 1, kind: input, shape index: {}]   ;;  %s1812_s2 = inlined_call_operand.hbm [shape: f32[24,1], index: 2, kind: input, shape index: {}]   ;;  %s1813_s3 = inlined_call_operand.hbm [shape: f32[64,64], index: 3, kind: input, shape index: {}]   ;;  %s1814_s4 = inlined_call_operand.hbm [shape: f32[2], index: 4, kind: input, shape index: {}]   ;;  %s1815_s5 = inlined_call_operand.hbm [shape: f32[2,8,64], index: 5, kind: output, shape index: {}]  }
   0x1   :  { %12 = vsyncpa [#allocation3 + $0x1], 0 }
   0x2   :  { %13 = vsyncpa [#allocation7], 0 }
   0x3   :  { %14 = vsyncpa [#allocation10], 0 }
   0x4   :  { %15 = vsyncpa [#allocation5], 0 }
   0x5   :  { %16 = vsyncpa [#allocation4], 0 }
   0x6   :  { %18 = vsyncpa [#allocation4 + $0x1], 0  ;;  %s1454_s18 = smov 0   ;;  %s1456_s19 = smov 0  }
   0x7   :  { %s1458_s20 = smov 0   ;;  %s1460_s21 = smov 0  }
   0x8   :  { %s1462_s22 = smov 0   ;;  %s1464_s23 = smov 0  }
   0x9 LB: > { %s923_s24 = sadd.s32 4294967295, %s1410_s23   ;;  %p925_p0 = scmp.ge.s32.totalorder %s1410_s23, 1  ;;  %s1410_s23 = sphi %s1464_s23, %s24_s23   ;;  %s1406_s22 = sphi %s1462_s22, %s1841_s22   ;;  %s1402_s21 = sphi %s1460_s21, %s1840_s21   ;;  %s1398_s20 = sphi %s1458_s20, %s1839_s20   ;;  %s1394_s19 = sphi %s1456_s19, %s1838_s19   ;;  %s1390_s18 = sphi %s1454_s18, %s1837_s18  }
   0xa   : > { %p1488_p1 = scmp.eq.s32.totalorder %s923_s24, 0  ;;  %p181_p2 = scmp.lt.s32.totalorder %s1410_s23, 3 }
   0xb   : > { %s1412_s27 = smov [#allocation6]   ;;  %s1413_s30 = smov [#allocation8]  }
   0xc   : > { %s1820_s25 = scalar_select %p1488_p1, 1, 0 }
   0xd   : > { %p1493_p3 = pnand %p925_p0, %p181_p2  ;;  %s193_s28 = sshll.u32 %s1412_s27, 4  ;;  %s1497_s28 = int_to_ptr.vmem [resolvable:$true] %s193_s28 }
   0xe   : > { %s206_s6 = sshll.u32 %s1413_s30, 4  ;;  %s1414_s7 = smov [#allocation9]   ;;  %s1508_s6 = int_to_ptr.vmem [resolvable:$true] %s206_s6 }
   0xf   : > { %s1821_s26 = scalar_select %p1493_p3, 1, 0 }
  0x10   : > { %p1067_p4 = pneg %p1493_p3  ;;  %s1510_s8 = sshll.u32 %s1414_s7, 4  ;;  %s220_s8 = int_to_ptr.vmem [resolvable:$true] %s1510_s8 }
  0x11   : > { %s1189_s11 = scalar_lea.hbm %s1811_s1, 384 }
  0x12   : > { %p1504_p6 = pnand %p1067_p4, %p1488_p1  ;;  %p1190_p7 = scmp.ne.s32.totalorder %s1811_s1, %s1189_s11 }
  0x13   : > { %p1196_p11 = scmp.lt.u32.totalorder %s1189_s11, %s1811_s1 }
  0x14   : > { %p1520_p8 = pneg %p1504_p6 }
  0x16   : > { %p1192_p9 = pnand %p1520_p8, %p1190_p7 }
  0x18   : > { %p1193_p10 = pneg %p1192_p9 }
  0x1a   : > { %p1198_p12 = pnand %p1196_p11, %p1193_p10 }
  0x1c   : > { %1201 = shalt.err (!%p1198_p12)
}
  0x1d   : > { %s1202_s17 = scalar_lea.vmem %s1497_s28, 384  ;;  %p1210_p4 = scmp.lt.s32.totalorder %s1497_s28, %s1497_s28 }
  0x1e   : > { %p1203_p13 = scmp.ne.s32.totalorder %s1497_s28, %s1202_s17  ;;  %p1211_p5 = scmp.lt.s32.totalorder %s1202_s17, %s1202_s17 }
  0x20   : > { %p1205_p0 = pnand %p1203_p13, %p1520_p8  ;;  %p1212_p7 = por %p1211_p5, %p1210_p4 }
  0x22   : > { %p1206_p2 = pneg %p1205_p0 }
  0x24   : > { %p1213_p9 = pnand %p1212_p7, %p1206_p2 }
  0x26   : > { %1216 = shalt.err (!%p1213_p9)
}
  0x27   : > { %s1415_s27 = smov 128   ;;  %s1416_s30 = smov 8  }
  0x28   : > { %1070 = dma.hbm_to_vmem [thread:$0]  (!%p1504_p6), %s1811_s1, 384, %s1497_s28, [#allocation7], %s1415_s27, %s1415_s27, %s1416_s30  }
  0x29   : > { %s1217_s12 = scalar_lea.hbm %s1812_s2, 384 }
  0x2a   : > { %p1218_p5 = scmp.ne.s32.totalorder %s1812_s2, %s1217_s12  ;;  %p1224_p12 = scmp.lt.u32.totalorder %s1217_s12, %s1812_s2 }
  0x2c   : > { %p1220_p10 = pnand %p1218_p5, %p1520_p8 }
  0x2e   : > { %p1221_p11 = pneg %p1220_p10 }
  0x30   : > { %p1226_p13 = pnand %p1224_p12, %p1221_p11 }
  0x32   : > { %1229 = shalt.err (!%p1226_p13)
}
  0x33   : > { %s1230_s28 = scalar_lea.vmem %s1508_s6, 384  ;;  %p1238_p7 = scmp.lt.s32.totalorder %s1508_s6, %s1508_s6 }
  0x34   : > { %p1231_p0 = scmp.ne.s32.totalorder %s1508_s6, %s1230_s28  ;;  %p1239_p9 = scmp.lt.s32.totalorder %s1230_s28, %s1230_s28 }
  0x36   : > { %p1233_p2 = pnand %p1231_p0, %p1520_p8  ;;  %p1240_p5 = por %p1239_p9, %p1238_p7 }
  0x38   : > { %p1234_p4 = pneg %p1233_p2 }
  0x3a   : > { %p1241_p10 = pnand %p1240_p5, %p1234_p4 }
  0x3c   : > { %1244 = shalt.err (!%p1241_p10)
}
  0x3d   : > { %1073 = dma.hbm_to_vmem [thread:$0]  (!%p1504_p6), %s1812_s2, 384, %s1508_s6, [#allocation7], %s1415_s27, %s1415_s27, %s1416_s30  }
  0x3e   : > { %s1245_s12 = scalar_lea.hbm %s1813_s3, 1024 }
  0x3f   : > { %p1246_p11 = scmp.ne.s32.totalorder %s1813_s3, %s1245_s12  ;;  %p1252_p0 = scmp.lt.u32.totalorder %s1245_s12, %s1813_s3 }
  0x41   : > { %p1248_p12 = pnand %p1246_p11, %p1520_p8 }
  0x43   : > { %p1249_p13 = pneg %p1248_p12 }
  0x45   : > { %p1254_p2 = pnand %p1252_p0, %p1249_p13 }
  0x47   : > { %1257 = shalt.err (!%p1254_p2)
}
  0x48   : > { %s1258_s28 = scalar_lea.vmem %s220_s8, 1024  ;;  %p1266_p5 = scmp.lt.s32.totalorder %s220_s8, %s220_s8 }
  0x49   : > { %p1259_p4 = scmp.ne.s32.totalorder %s220_s8, %s1258_s28  ;;  %p1267_p10 = scmp.lt.s32.totalorder %s1258_s28, %s1258_s28 }
  0x4b   : > { %p1261_p7 = pnand %p1259_p4, %p1520_p8  ;;  %p1268_p3 = por %p1267_p10, %p1266_p5 }
  0x4d   : > { %p1262_p9 = pneg %p1261_p7 }
  0x4f   : > { %p1269_p1 = pnand %p1268_p3, %p1262_p9 }
  0x51   : > { %1272 = shalt.err (!%p1269_p1)
}
  0x52   : > { %1076 = dma.hbm_to_vmem [thread:$0]  (!%p1504_p6), %s1813_s3, 1024, %s220_s8, [#allocation10], %s1415_s27, %s1415_s27, %s1416_s30  }
  0x53   : > { %s1273_s11 = scalar_lea.hbm %s1814_s4, 16 }
  0x54   : > { %p1274_p11 = scmp.ne.s32.totalorder %s1814_s4, %s1273_s11  ;;  %p1280_p12 = scmp.lt.u32.totalorder %s1273_s11, %s1814_s4 }
  0x56   : > { %p1276_p1 = pnand %p1274_p11, %p1520_p8 }
  0x58   : > { %p1277_p3 = pneg %p1276_p1 }
  0x5a   : > { %p1282_p13 = pnand %p1280_p12, %p1277_p3 }
  0x5c   : > { %1285 = shalt.err (!%p1282_p13)
}
  0x5d   : > { %s1417_s17 = smov [#allocation11]   ;;  %s924_s14 = sadd.s32 4294967294, %s1410_s23  }
  0x5e   : > { %1079 = dma.hbm_to_smem (!%p1504_p6), %s1814_s4, 16, %s1417_s17, [#allocation5]  }
  0x5f   : > { %s36_s30 = sadd.s32 1, %s1406_s22  ;;  %s45_s29 = sadd.s32 1, %s1398_s20 }
  0x60   : > { %p38_p8 = scmp.ge.s32.totalorder %s36_s30, 2  ;;  %p52_p0 = scmp.ne.s32.totalorder %s1398_s20, %s1394_s19 }
  0x61   : > { %p53_p2 = scmp.eq.s32.totalorder %s1410_s23, 0  ;;  %p58_p7 = scmp.ne.s32.totalorder %s1394_s19, %s1390_s18 }
  0x62   : > { %s1843_s30 = smov (%p38_p8, %s36_s30), 0  ;;  %p168_p6 = scmp.eq.s32.totalorder %s923_s24, 1 }
  0x63   : > { %p1616_p4 = por %p53_p2, %p52_p0  ;;  %s40_s6 = ssub.s32 %s1406_s22, %s1843_s30 }
  0x64   : > { %p43_p9 = scmp.eq.s32.totalorder %s40_s6, 0  ;;  %p1825_p5 = scmp.ne.s32.totalorder %s1820_s25, 0 }
  0x65   : > { %p1632_p11 = por %p168_p6, %p52_p0  ;;  %p174_p1 = scmp.eq.s32.totalorder %s924_s14, 1 }
  0x66   : > { %p1628_p10 = por %p1825_p5, %p58_p7  ;;  %p1092_p12 = scmp.lt.s32.totalorder %s1410_s23, 2 }
  0x67   : > { %s1827_s9 = scalar_select %p1632_p11, 1, 0 }
  0x68   : > { %s1637_s10 = scalar_select %p43_p9, %s1398_s20, %s45_s29  }
  0x69   : > { %p1639_p3 = por %p174_p1, %p58_p7  ;;  %s242_s12 = sand.u32 1, %s1398_s20  }
  0x6a   : > { %s932_s24 = sshll.u32 %s1406_s22, 7  ;;  %s931_s13 = sshll.u32 %s242_s12, 3 }
  0x6b   : > { %s1828_s11 = scalar_select %p1639_p3, 1, 0 }
  0x6c   : > { %s1649_s17 = scalar_lea.hbm %s1810_s0, %s932_s24  ;;  %s246_s8 = scalar_lea.vmem [#allocation2], %s931_s13 }
  0x6d   : > { %s254_s27 = sshll.u32 %s246_s8, 4  ;;  %p1653_p13 = pnand %p1092_p12, %p1616_p4  ;;  %s1657_s27 = int_to_ptr.vmem [resolvable:$true] %s254_s27 }
  0x6e   : > { %s243_s29 = scalar_lea.sflag [#allocation3], %s242_s12  ;;  %s1286_s6 = scalar_lea.hbm %s1649_s17, 128 }
  0x6f   : > { %p1287_p8 = scmp.ne.s32.totalorder %s1649_s17, %s1286_s6  ;;  %p1288_p0 = pneg %p1653_p13 }
  0x70   : > { %s1291_s28 = scalar_lea.hbm %s1810_s0, 256  ;;  %p1292_p4 = scmp.lt.u32.totalorder %s1649_s17, %s1810_s0 }
  0x71   : > { %p1289_p2 = pnand %p1288_p0, %p1287_p8  ;;  %p1293_p6 = scmp.lt.u32.totalorder %s1291_s28, %s1286_s6 }
  0x72   : > { %p1295_p5 = scmp.lt.u32.totalorder %s1286_s6, %s1649_s17 }
  0x73   : > { %p1290_p7 = pneg %p1289_p2  ;;  %p1294_p9 = por %p1293_p6, %p1292_p4 }
  0x75   : > { %p1296_p1 = por %p1295_p5, %p1294_p9 }
  0x77   : > { %p1297_p12 = pnand %p1296_p1, %p1290_p7 }
  0x79   : > { %1300 = shalt.err (!%p1297_p12)
}
  0x7a   : > { %s1301_s12 = scalar_lea.vmem %s1657_s27, 128  ;;  %s1418_s8 = smov [#allocation2]  }
  0x7b   : > { %p1302_p8 = scmp.ne.s32.totalorder %s1657_s27, %s1301_s12  ;;  %s1306_s24 = sshll.u32 %s1418_s8, 4  ;;  %s1307_s24 = int_to_ptr.vmem [resolvable:$false] %s1306_s24 }
  0x7c   : > { %s1308_s13 = scalar_lea.vmem %s1307_s24, 256  ;;  %p1309_p11 = scmp.lt.s32.totalorder %s1657_s27, %s1307_s24 }
  0x7d   : > { %p1304_p2 = pnand %p1302_p8, %p1288_p0  ;;  %p1310_p4 = scmp.lt.s32.totalorder %s1308_s13, %s1301_s12 }
  0x7f   : > { %p1305_p3 = pneg %p1304_p2  ;;  %p1311_p6 = por %p1310_p4, %p1309_p11 }
  0x81   : > { %p1312_p9 = pnand %p1311_p6, %p1305_p3 }
  0x83   : > { %1315 = shalt.err (!%p1312_p9)
}
  0x84   : > { %1083 = dma.hbm_to_vmem [thread:$0]  (!%p1653_p13), %s1649_s17, 128, %s1657_s27, %s243_s29  }
  0x85   : > { %p1830_p7 = scmp.ne.s32.totalorder %s1821_s26, 0 }
  0x86   : > { %s1687_s6 = sand.u32 (!%p1830_p7), 1, %s1394_s19  }
  0x87   : > { %263 = sbr.rel (%p1830_p7) target bundleno = 1298 (0x512), region = 40  ;;  %s934_s28 = sshll.u32 (!%p1830_p7), %s1687_s6, 3 }
  0x88   : > { %s266_s15 = scalar_lea.sflag (!%p1830_p7), [#allocation3], %s1687_s6  ;;  %s269_s16 = scalar_lea.vmem (!%p1830_p7), [#allocation2], %s934_s28 }
  0x8e   : > { %1369 = dma.done.wait (%p1628_p10), %s266_s15, 128  }
  0x8f   : > { %1371 = vsyncadd (%p1628_p10), %s266_s15, 4294967168  ;;  %p1831_p11 = scmp.ne.s32.totalorder %s1820_s25, 0 }
  0x91   : > { %1373 = dma.done.wait (%p1831_p11), [#allocation7], 768  }
  0x92   : > { %1375 = vsyncadd (%p1831_p11), [#allocation7], 4294966528 }
  0x93   : > { %1377 = dma.done.wait (%p1831_p11), [#allocation10], 1024  }
  0x94   : > { %1379 = vsyncadd (%p1831_p11), [#allocation10], 4294966272 }
  0x95   : > { %1381 = dma.done.wait (%p1831_p11), [#allocation5], 16  }
  0x96   : > { %1383 = vsyncadd (%p1831_p11), [#allocation5], 4294967280 }
  0x97   : > { %290 = sfence }
  0x98   : > { %v313_v0 = vld [vmem:[%s269_s16] sm:$0xff]  ;;  %v314_v1 = vld [vmem:[#allocation6] sm:$0xff]  ;;  %vm335_vm0 = vcmask 64512   ;;  %v1419_v2 = vmov 0.0   ;;  %vm1420_vm1 = vmmov 0   ;;  %v1421_v4 = vmov 0  }
  0x99   : > { %987 = vmatprep.subr.mxu1 %v1419_v2  ;;  %989 = vmatprep.mubr.msk.f32.mxu1 %vm1420_vm1, %v1419_v2  ;;  %v317_v3 = vld [vmem:[#allocation8] sm:$0xff]  ;;  %v315_v5 = vld [vmem:[#allocation6 + $0x8] sm:$0xff]  ;;  %v318_v6 = vld [vmem:[#allocation8 + $0x8] sm:$0xff]  ;;  %vm594_vm2 = vcmask 523264   ;;  %s780_s25 = sld [smem:[#allocation11]]  ;;  %s960_s26 = sld [smem:[#allocation11 + $0x1]] }
  0x9a   : > { %988 = vmatpush3.msra.mxu1 %v313_v0  ;;  %1156 = vset.pattern.permute.xlu0 %v1421_v4  ;;  %v316_v7 = vld [vmem:[#allocation6 + $0x10] sm:$0xff]  ;;  %v426_v26 = vld [vmem:[#allocation9 + $0x8] sm:$0xff]  ;;  %v428_v34 = vld [vmem:[#allocation9 + $0x18] sm:$0xff]  ;;  %s962_s7 = sshll.u32 %s1402_s21, 7  ;;  %s312_s17 = scalar_lea.vmem [#allocation12], %s934_s28 }
  0x9b   : > { %990 = vmatmul.mubr.msk.f32.vlgmr.msra.gmra.mrb[0].mxu1 %vm335_vm0, %v314_v1  ;;  %322 = vperm.xlu0 %1156, %v317_v3   ;;  %v425_v27 = vld [vmem:[#allocation9] sm:$0xff]  ;;  %v427_v36 = vld [vmem:[#allocation9 + $0x10] sm:$0xff]  ;;  %v430_v41 = vld [vmem:[#allocation9 + $0x28] sm:$0xff]  ;;  %s802_s27 = sshll.u32 %s312_s17, 4  ;;  %s1760_s12 = scalar_lea.hbm %s1815_s5, %s962_s7  ;;  %s1762_s27 = int_to_ptr.vmem [resolvable:$true] %s802_s27 }
  0x9c   : > { %992 = vmatprep.mubr.msk.f32.mxu1 %vm1420_vm1, %v1419_v2  ;;  %1028 = vmatprep.mubr.msk.f32.mxu0 %vm1420_vm1, %v1419_v2  ;;  %v429_v44 = vld [vmem:[#allocation9 + $0x20] sm:$0xff]  ;;  %v431_v50 = vld [vmem:[#allocation9 + $0x30] sm:$0xff]  ;;  %v432_v52 = vld [vmem:[#allocation9 + $0x38] sm:$0xff]  ;;  %s788_s8 = scalar_lea.sflag [#allocation4], %s1687_s6  ;;  %s1316_s21 = scalar_lea.vmem %s1762_s27, 128 }
  0x9d   : > { %vm1740_vm3 = vmpackc.low %vm594_vm2, %vm594_vm2  ;;  %p1317_p10 = scmp.ne.s32.totalorder %s1762_s27, %s1316_s21  ;;  %p1834_p3 = scmp.ne.s32.totalorder %s1827_s9, 0 }
  0x9e   : > { %s1423_s24 = smov [#allocation12]  }
  0x9f   : > { %993 = vmatmul.mubr.msk.f32.gmra.mrb[2].mxu1 %vm335_vm0, %v315_v5  ;;  %327 = vperm.xlu0 %1156, %v318_v6   ;;  %p1318_p13 = pnand %p1317_p10, %p1834_p3  ;;  %s1320_s13 = sshll.u32 %s1423_s24, 4  ;;  %s1321_s13 = int_to_ptr.vmem [resolvable:$false] %s1320_s13 }
  0xa0   : > { %995 = vmatprep.mubr.msk.f32.mxu1 %vm1420_vm1, %v1419_v2  ;;  %s1322_s28 = scalar_lea.vmem %s1321_s13, 256  ;;  %p1323_p5 = scmp.lt.s32.totalorder %s1762_s27, %s1321_s13 }
  0xa1   : > { %p1319_p0 = pneg %p1318_p13  ;;  %p1324_p1 = scmp.lt.s32.totalorder %s1322_s28, %s1316_s21 }
  0xa3   : > { %996 = vmatmul.mubr.msk.f32.gmra.mrb[4].mxu1 %vm335_vm0, %v316_v7  ;;  %p1325_p12 = por %p1324_p1, %p1323_p5 }
  0xa5   : > { %p1326_p8 = pnand %p1325_p12, %p1319_p0 }
 0x11a   : > { %v323_v8 = vpop.permute.xlu0 %322 }
 0x11e   : > { %v328_v12 = vpop.permute.xlu0 %327 }
 0x16e   : > { %v411_v9 = vpop.f32.mrb[0].mxu1 }
 0x16f   : > { %v991_v10 = vpop.f32.mrb[1].mxu1  ;;  %v412_v11 = vadd.f32 %v411_v9, %v323_v8 }
 0x171   : > { %433 = vxpose.xlu1.b32.start.end [1/1] (short) (narrow) %v412_v11, 64 }
 0x172   : > { %v416_v13 = vpop.f32.mrb[2].mxu1 }
 0x173   : > { %v417_v14 = vadd.f32 %v416_v13, %v328_v12  ;;  %v994_v15 = vpop.f32.mrb[3].mxu1 }
 0x175   : > { %998 = vmatprep.subr.mxu1 %v417_v14 }
 0x176   : > { %999 = vmatpush3.msra.mxu1 %v417_v14  ;;  %v1712_v16 = vpop.f32.mrb[4].mxu1 }
 0x177   : > { %v997_v17 = vpop.f32.mrb[5].mxu1 }
 0x1f1   : > { %v449_v18 = vpop.trf.xlu1 }
 0x1f2   : > { %1000 = vmatprep.mubr.msk.f32.mxu1 %vm335_vm0, %v449_v18 }
 0x1f5   : > { %v450_v19 = vpop.trf.xlu1 }
 0x1f6   : > { %1001 = vmatmul.mubr.msk.f32.vlgmr.msra.gmra.mrb[6].mxu1 %vm335_vm0, %v450_v19 }
 0x1f9   : > { %v451_v20 = vpop.trf.xlu1 }
 0x1fa   : > { %1003 = vmatprep.mubr.msk.f32.mxu1 %vm335_vm0, %v451_v20 }
 0x1fd   : > { %v452_v21 = vpop.trf.xlu1 }
 0x1fe   : > { %1004 = vmatmul.mubr.msk.f32.gmra.mrb[8].mxu1 %vm335_vm0, %v452_v21 }
 0x201   : > { %v453_v22 = vpop.trf.xlu1 }
 0x202   : > { %1006 = vmatprep.mubr.msk.f32.mxu1 %vm335_vm0, %v453_v22 }
 0x205   : > { %v454_v23 = vpop.trf.xlu1 }
 0x206   : > { %1007 = vmatmul.mubr.msk.f32.gmra.mrb[10].mxu1 %vm335_vm0, %v454_v23 }
 0x209   : > { %v455_v24 = vpop.trf.xlu1 }
 0x20a   : > { %1009 = vmatprep.mubr.msk.f32.mxu1 %vm335_vm0, %v455_v24 }
 0x20d   : > { %v456_v25 = vpop.trf.xlu1 }
 0x20e   : > { %1010 = vmatmul.mubr.msk.f32.gmra.mrb[12].mxu1 %vm335_vm0, %v456_v25 }
 0x2c9   : > { %v1002_v28 = vpop.f32.mrb[6].mxu1 }
 0x2ca   : > { %v561_v29 = vadd.f32 %v1002_v28, %v426_v26  ;;  %v555_v30 = vpop.f32.mrb[7].mxu1 }
 0x2cb   : > { %v556_v31 = vadd.f32 %v555_v30, %v425_v27 }
 0x2cc   : > { %v598_v32 = vsel %vm594_vm2, %v561_v29, -inf }
 0x2cd   : > { %599 = vmax.xlane.f32.xlu0 %v598_v32  ;;  %v595_v33 = vsel %vm594_vm2, %v556_v31, -inf }
 0x2ce   : > { %596 = vmax.xlane.f32.xlu1 %v595_v33 }
 0x2d1   : > { %v1005_v35 = vpop.f32.mrb[8].mxu1 }
 0x2d2   : > { %v571_v37 = vadd.f32 %v1005_v35, %v428_v34  ;;  %v565_v38 = vpop.f32.mrb[9].mxu1  ;;  %v1422_v35 = vmov 0.0|0.0  }
 0x2d3   : > { %v566_v39 = vadd.f32 %v565_v38, %v427_v36  ;;  %1031 = vmatprep.subr.bf16.mxu0 %v1422_v35  ;;  %v319_v36 = vld [vmem:[#allocation8 + $0x10] sm:$0xff] }
 0x2d4   : > { %v604_v40 = vsel %vm594_vm2, %v571_v37, -inf }
 0x2d5   : > { %605 = vmax.xlane.f32.xlu0 %v604_v40  ;;  %v601_v42 = vsel %vm594_vm2, %v566_v39, -inf }
 0x2d9   : > { %v1008_v43 = vpop.f32.mrb[10].mxu1  ;;  %602 = vmax.xlane.f32.xlu0 %v601_v42 }
 0x2da   : > { %v581_v45 = vadd.f32 %v1008_v43, %v430_v41  ;;  %v575_v46 = vpop.f32.mrb[11].mxu1 }
 0x2db   : > { %v576_v47 = vadd.f32 %v575_v46, %v429_v44 }
 0x2dc   : > { %v610_v48 = vsel %vm594_vm2, %v581_v45, -inf }
 0x2dd   : > { %611 = vmax.xlane.f32.xlu0 %v610_v48  ;;  %v607_v49 = vsel %vm594_vm2, %v576_v47, -inf }
 0x2e1   : > { %v1011_v51 = vpop.f32.mrb[12].mxu1  ;;  %608 = vmax.xlane.f32.xlu0 %v607_v49 }
 0x2e2   : > { %v585_v53 = vpop.f32.mrb[13].mxu1  ;;  %v591_v55 = vadd.f32 %v1011_v51, %v432_v52 }
 0x2e3   : > { %v586_v54 = vadd.f32 %v585_v53, %v431_v50 }
 0x2e4   : > { %v616_v57 = vsel %vm594_vm2, %v591_v55, -inf }
 0x2e5   : > { %v613_v56 = vsel %vm594_vm2, %v586_v54, -inf }
 0x2e6   : > { %614 = vmax.xlane.f32.xlu0 %v613_v56 }
 0x2ea   : > { %617 = vmax.xlane.f32.xlu0 %v616_v57 }
 0x35a   : > { %v600_v58 = vpop.xlane.xlu0 %599 }
 0x35b   : > { %v620_v59 = vsub.f32 %v561_v29, %v600_v58  ;;  %v597_v60 = vpop.xlane.xlu1 %596 }
 0x35c   : > { %v619_v61 = vsub.f32 %v556_v31, %v597_v60 }
 0x35d   : > { %v629_v62 = vmul.f32 1.442695, %v620_v59 }
 0x35e   : > { %v627_v63 = vmul.f32 1.442695, %v619_v61 }
 0x360   : > { %1157 = vpow2.f32 %v627_v63 }
 0x361   : > { %1159 = vpow2.f32 %v629_v62 }
 0x362   : > { %v606_v0 = vpop.xlane.xlu0 %605 }
 0x363   : > { %v622_v1 = vsub.f32 %v571_v37, %v606_v0 }
 0x365   : > { %v633_v2 = vmul.f32 1.442695, %v622_v1 }
 0x366   : > { %v603_v3 = vpop.xlane.xlu0 %602 }
 0x367   : > { %1161 = vpow2.f32 %v633_v2  ;;  %v621_v4 = vsub.f32 %v566_v39, %v603_v3 }
 0x369   : > { %v631_v5 = vmul.f32 1.442695, %v621_v4  ;;  %v781_v4 = vstv %s780_s25 }
 0x36a   : > { %v1158_v6 = vpop.eup %1157  ;;  %v612_v7 = vpop.xlane.xlu0 %611 }
 0x36b   : > { %1163 = vpow2.f32 %v631_v5  ;;  %v624_v8 = vsub.f32 %v581_v45, %v612_v7  ;;  %v643_v9 = vsel %vm594_vm2, %v1158_v6, 0.0  ;;  %v1160_v10 = vpop.eup %1159 }
 0x36c   : > { %644 = vadd.xlane.f32.xlu0 %v643_v9  ;;  %v646_v14 = vsel %vm594_vm2, %v1160_v10, 0.0 }
 0x36d   : > { %v637_v11 = vmul.f32 1.442695, %v624_v8 }
 0x36e   : > { %v609_v12 = vpop.xlane.xlu0 %608 }
 0x36f   : > { %1165 = vpow2.f32 %v637_v11  ;;  %v623_v13 = vsub.f32 %v576_v47, %v609_v12 }
 0x370   : > { %647 = vadd.xlane.f32.xlu0 %v646_v14 }
 0x371   : > { %v1162_v15 = vpop.eup %1161  ;;  %v635_v17 = vmul.f32 1.442695, %v623_v13 }
 0x372   : > { %v652_v18 = vsel %vm594_vm2, %v1162_v15, 0.0 }
 0x373   : > { %1167 = vpow2.f32 %v635_v17  ;;  %v615_v19 = vpop.xlane.xlu0 %614  ;;  %653 = vadd.xlane.f32.xlu1 %v652_v18 }
 0x374   : > { %v625_v20 = vsub.f32 %v586_v54, %v615_v19 }
 0x375   : > { %v1164_v21 = vpop.eup %1163 }
 0x376   : > { %v639_v22 = vmul.f32 1.442695, %v625_v20  ;;  %v649_v23 = vsel %vm594_vm2, %v1164_v21, 0.0 }
 0x377   : > { %v618_v24 = vpop.xlane.xlu0 %617  ;;  %650 = vadd.xlane.f32.xlu0 %v649_v23 }
 0x378   : > { %1169 = vpow2.f32 %v639_v22  ;;  %v626_v25 = vsub.f32 %v591_v55, %v618_v24 }
 0x379   : > { %v1166_v26 = vpop.eup %1165 }
 0x37a   : > { %v641_v27 = vmul.f32 1.442695, %v626_v25  ;;  %v658_v28 = vsel %vm594_vm2, %v1166_v26, 0.0 }
 0x37b   : > { %659 = vadd.xlane.f32.xlu1 %v658_v28 }
 0x37c   : > { %1171 = vpow2.f32 %v641_v27 }
 0x37d   : > { %v1168_v29 = vpop.eup %1167 }
 0x37e   : > { %v655_v30 = vsel %vm594_vm2, %v1168_v29, 0.0 }
 0x37f   : > { %656 = vadd.xlane.f32.xlu0 %v655_v30 }
 0x382   : > { %v1170_v31 = vpop.eup %1169 }
 0x383   : > { %v661_v32 = vsel %vm594_vm2, %v1170_v31, 0.0 }
 0x384   : > { %662 = vadd.xlane.f32.xlu0 %v661_v32 }
 0x386   : > { %v1172_v33 = vpop.eup %1171 }
 0x387   : > { %v664_v34 = vsel %vm594_vm2, %v1172_v33, 0.0 }
 0x388   : > { %665 = vadd.xlane.f32.xlu1 %v664_v34 }
 0x39a   : > { %332 = vperm.xlu0 %1156, %v319_v36  }
 0x3f9   : > { %v645_v37 = vpop.xlane.xlu0 %644 }
 0x3fa   : > { %1173 = vrcp.f32 %v645_v37 }
 0x3fd   : > { %v648_v38 = vpop.xlane.xlu0 %647 }
 0x3fe   : > { %1175 = vrcp.f32 %v648_v38 }
 0x400   : > { %v654_v39 = vpop.xlane.xlu1 %653 }
 0x401   : > { %1177 = vrcp.f32 %v654_v39 }
 0x404   : > { %v651_v40 = vpop.xlane.xlu0 %650  ;;  %v1174_v41 = vpop.eup %1173 }
 0x405   : > { %1179 = vrcp.f32 %v651_v40  ;;  %v675_v44 = vmul.f32 %v1174_v41, %v1158_v6  ;;  %v784_v6 = vstv %s960_s26 }
 0x408   : > { %v1176_v42 = vpop.eup %1175  ;;  %v660_v43 = vpop.xlane.xlu1 %659 }
 0x409   : > { %v676_v45 = vmul.f32 %v1176_v42, %v1160_v10  ;;  %1181 = vrcp.f32 %v660_v43 }
 0x40b   : > { %v1032_v47 = vpack.c.bf16 %v676_v45, %v675_v44  ;;  %v1178_v49 = vpop.eup %1177 }
 0x40c   : > { %v657_v48 = vpop.xlane.xlu0 %656  ;;  %v678_v52 = vmul.f32 %v1178_v49, %v1162_v15 }
 0x40d   : > { %1183 = vrcp.f32 %v657_v48  ;;  %1034 = vmatpush3.bf16.xpose.msk.msra.mxu0 %vm1740_vm3, %v1032_v47 }
 0x40e   : > { %1035 = vmatprep.subr.bf16.mxu0 %v1422_v35 }
 0x40f   : > { %v1180_v50 = vpop.eup %1179 }
 0x410   : > { %v677_v51 = vmul.f32 %v1180_v50, %v1164_v21 }
 0x411   : > { %v663_v53 = vpop.xlane.xlu0 %662 }
 0x412   : > { %v1036_v54 = vpack.c.bf16 %v678_v52, %v677_v51  ;;  %1185 = vrcp.f32 %v663_v53 }
 0x413   : > { %v1182_v55 = vpop.eup %1181 }
 0x414   : > { %v680_v59 = vmul.f32 %v1182_v55, %v1166_v26 }
 0x415   : > { %1038 = vmatpush3.bf16.xpose.msk.msra.mxu0 %vm1740_vm3, %v1036_v54  ;;  %v666_v56 = vpop.xlane.xlu1 %665 }
 0x416   : > { %1187 = vrcp.f32 %v666_v56  ;;  %1039 = vmatprep.subr.bf16.mxu0 %v1422_v35 }
 0x417   : > { %v1184_v57 = vpop.eup %1183 }
 0x418   : > { %v679_v58 = vmul.f32 %v1184_v57, %v1168_v29 }
 0x419   : > { %v333_v2 = vpop.permute.xlu0 %332 }
 0x41a   : > { %v1040_v60 = vpack.c.bf16 %v680_v59, %v679_v58  ;;  %v422_v3 = vadd.f32 %v1712_v16, %v333_v2 }
 0x41c   : > { %v1186_v61 = vpop.eup %1185 }
 0x41d   : > { %1042 = vmatpush3.bf16.xpose.msk.msra.mxu0 %vm1740_vm3, %v1040_v60  ;;  %v681_v63 = vmul.f32 %v1186_v61, %v1170_v31 }
 0x41e   : > { %1043 = vmatprep.subr.bf16.mxu0 %v1422_v35 }
 0x420   : > { %v1188_v62 = vpop.eup %1187 }
 0x421   : > { %v682_v0 = vmul.f32 %v1188_v62, %v1172_v33 }
 0x423   : > { %v1044_v1 = vpack.c.bf16 %v682_v0, %v681_v63 }
 0x425   : > { %1046 = vmatpush3.bf16.xpose.msk.msra.mxu0 %vm1740_vm3, %v1044_v1 }
 0x42c   : > { %1029 = vmatmul.mubr.msk.f32.vlgmr.msra.gmra.mrb[0].mxu0 %vm594_vm2, %v422_v3 }
 0x4ff   : > { %v776_v5 = vpop.f32.mrb[0].mxu0 }
 0x500   : > { %v782_v7 = vmul.f32 %v781_v4, %v776_v5  ;;  %v1030_v8 = vpop.f32.mrb[1].mxu0 }
 0x502   : > { %v785_v9 = vadd.f32 %v784_v6, %v782_v7 }
 0x504   : > { %786 = vst.msk [vmem:[%s312_s17] sm:$0xff] %vm594_vm2, %v785_v9 }
 0x505   : > { %1329 = shalt.err (!%p1326_p8)
}
 0x506   : > { %s1330_s6 = scalar_lea.hbm %s1760_s12, 128  ;;  %s1334_s25 = scalar_lea.hbm %s1815_s5, 256 }
 0x507   : > { %p1331_p2 = scmp.ne.s32.totalorder %s1760_s12, %s1330_s6  ;;  %p1335_p9 = scmp.lt.u32.totalorder %s1760_s12, %s1815_s5 }
 0x508   : > { %p1336_p7 = scmp.lt.u32.totalorder %s1334_s25, %s1330_s6  ;;  %p1338_p10 = scmp.lt.u32.totalorder %s1330_s6, %s1760_s12 }
 0x509   : > { %p1332_p4 = pnand %p1331_p2, %p1834_p3 }
 0x50a   : > { %p1337_p11 = por %p1336_p7, %p1335_p9 }
 0x50b   : > { %p1333_p6 = pneg %p1332_p4 }
 0x50c   : > { %p1339_p13 = por %p1338_p10, %p1337_p11 }
 0x50e   : > { %p1340_p0 = pnand %p1339_p13, %p1333_p6 }
 0x510   : > { %1343 = shalt.err (!%p1340_p0)
}
 0x511   : > { %1065 = dma.vmem_to_hbm [thread:$0]  (%p1834_p3), %s1762_s27, 128, %s1760_s12, %s788_s8  }
 0x512 PF: > { %s814_s17 = sand.u32 1, %s1390_s18   ;;  %p1835_p5 = scmp.ne.s32.totalorder %s1828_s11, 0 }
 0x513   : > { %p1836_p1 = scmp.ge.s32.totalorder %s1410_s23, 2  ;;  %s815_s14 = scalar_lea.sflag [#allocation4], %s814_s17 }
 0x515   : > { %p1085_p12 = pnand %p1836_p1, %p1835_p5 }
 0x517   : > { %1385 = dma.done.wait (!%p1085_p12), %s815_s14, 128  }
 0x518   : > { %1387 = vsyncadd (!%p1085_p12), %s815_s14, 4294967168  ;;  %s24_s23 = sadd.s32 1, %s1410_s23   ;;  %s1837_s18 = smov %s1394_s19 }
 0x519   : > { %p21_p8 = scmp.ge.s32.totalorder %s24_s23, 4   ;;  %s1838_s19 = smov %s1398_s20 }
 0x51a   : > { %s1839_s20 = smov %s1637_s10  ;;  %s1840_s21 = smov %s1406_s22 }
 0x51b   : > { %s1841_s22 = smov %s1843_s30  ;;  %23 = sbr.rel (!%p21_p8) target bundleno = 9 (0x9), region = 102 }
 0x522   :  { %820 = vsyncpa [#allocation3], 1 }
 0x523   :  { %822 = vsyncpa [#allocation3 + $0x1], 1 }
 0x524   :  { %823 = vsyncpa [#allocation7], 1 }
 0x525   :  { %824 = vsyncpa [#allocation10], 1 }
 0x526   :  { %825 = vsyncpa [#allocation4], 1 }
 0x527   :  { %827 = vsyncpa [#allocation4 + $0x1], 1 }
 0x528   :  { %828 = vsyncpa [#allocation5], 1 }
 0x529   :  { %830 = vsyncpa [#allocation5 + $0x1], 1 }

</bundles_post_ra>
